<compile_context>
chip_gen: v7x
topology: tpu7x:2x2x1
jax: 0.10.0
libtpu: 0.0.40
codegen_flags: <defaults>
</compile_context>

<pallas_src>
import jax
import jax.numpy as jnp
import numpy as np
from jax.experimental import pallas as pl
from jax.experimental.pallas import tpu as pltpu


def plm_hyp_kernel(seq_ref, mask_ref, watt_ref, wcls_ref, bcls_ref,
                   logits_ref, rep_ref, text_ref):
    seq = seq_ref[...]                            # [tm, s, h]  native dtype (bf16/f32)
    mask = mask_ref[...]                          # [tm, 1, s]  int32
    watt = watt_ref[...]                          # [c, h]      attention.weight (seq dtype)
    wcls = wcls_ref[...]                          # [c, c*h]    classifier.weight (seq dtype, lane-dense)
    bcls = bcls_ref[...].astype(jnp.float32)      # [1, c]      classifier.bias

    tm, s, h = seq.shape
    c = watt.shape[0]
    cdt = seq.dtype

    # text_enc = sequence_output[:, 0, :]
    text_ref[...] = seq[:, 0, :].astype(text_ref.dtype)

    # ---- attention scores: one long-M weight-stationary MXU dot -------------
    # [tm*s, h] @ watt[c, h]^T -> [tm*s, c]; bf16 feeds, f32 accumulation.
    seq2d = seq.reshape(tm * s, h)
    scores_flat = jax.lax.dot_general(
        seq2d, watt,
        dimension_numbers=(((1,), (1,)), ((), ())),
        preferred_element_type=jnp.float32)                       # [tm*s, c] f32
    # tiny relayout so the softmax axis (s) is lane-dense.
    scores = jnp.transpose(scores_flat.reshape(tm, s, c), (0, 2, 1))   # [tm, c, s] f32

    # masked_fill(~mask, -inf): large finite negative so fully-masked / padded
    # rows never hit -inf - (-inf) = NaN.
    scores = jnp.where(mask != 0, scores, jnp.float32(-1e30))

    # softmax over the sequence axis, f32 (exp + approx reciprocal on the EUP).
    smax = jnp.max(scores, axis=-1, keepdims=True)
    e = jnp.exp(scores - smax)
    denom = jnp.sum(e, axis=-1, keepdims=True)
    attn = e * pl.reciprocal(denom, approx=True)                  # [tm, c, s] f32

    # ---- representation = attention @ sequence_output -> [tm, c, h] ---------
    # bf16 feeds, f32 accumulation.
    # TODO(synk): per perf review a seq-streamed / attn-stationary formulation
    # would avoid reloading the (s, h) seq block as MXU weights per sample, but
    # the robust Pallas spellings (transposed-LHS dot_general or a VPU weighted
    # row-sum) risk large Mosaic relayouts / vreg spills at (s=512, h=768); the
    # bf16 feeds already remove the multi-pass f32 MXU cost, so the standard
    # batched contraction is kept.
    rep_acc = jnp.einsum('mcs,msh->mch', attn.astype(cdt), seq,
                         preferred_element_type=jnp.float32)      # [tm, c, h] f32
    rep_ref[...] = rep_acc.astype(rep_ref.dtype)

    # ---- logits = classifier(rep_vec): [tm, c*h] @ wcls[c, c*h]^T + b -------
    rep2 = rep_acc.reshape(tm, c * h).astype(cdt)
    logits = jax.lax.dot_general(
        rep2, wcls,
        dimension_numbers=(((1,), (1,)), ((), ())),
        preferred_element_type=jnp.float32) + bcls                # [tm, c] f32
    logits_ref[...] = logits


def plm_hyp_forward(sequence_output, attention_mask, labels, w_att, w_cls, b_cls,
                    block_m=None):
    """sequence_output: [m, s, h] encoder last hidden state (keep it in the
    encoder's native dtype — bf16 recommended — it is the only large HBM stream),
    attention_mask: [m, s], labels: [m], w_att: [c, h], w_cls: [c, c*h], b_cls: [c]."""
    m, s, h = sequence_output.shape
    c = w_att.shape[0]
    cdt = sequence_output.dtype

    # batch tile: 8 rows for f32 seq, 16 for bf16 (VMEM on v7x's 64 MiB), and
    # keep >= 2 grid steps when the batch allows it (v7x dual-TC sharding).
    if block_m is None:
        block_m = 16 if cdt == jnp.bfloat16 else 8
    while block_m > 8 and m <= block_m:
        block_m //= 2
    tm = block_m if m >= block_m else m
    m_pad = pl.cdiv(m, tm) * tm

    seq = sequence_output                       # native dtype, no wrapper cast
    mask3 = attention_mask.astype(jnp.int32).reshape(m, 1, s)
    if m_pad != m:
        pad = m_pad - m
        seq = jnp.pad(seq, ((0, pad), (0, 0), (0, 0)))
        mask3 = jnp.pad(mask3, ((0, pad), (0, 0), (0, 0)))   # padded rows: mask=0, finite softmax

    watt = w_att.astype(cdt)                    # [c, h]     bf16 MXU feed if seq is bf16
    wcls = w_cls.astype(cdt)                    # [c, c*h]   lane-dense, no host transpose
    bcls2 = b_cls.astype(jnp.float32).reshape(1, c)

    grid = (m_pad // tm,)
    in_specs = [
        pl.BlockSpec((tm, s, h), lambda i: (i, 0, 0)),   # seq tile (streamed, double-buffered)
        pl.BlockSpec((tm, 1, s), lambda i: (i, 0, 0)),   # mask tile
        pl.BlockSpec((c, h),     lambda i: (0, 0)),      # attention.weight  (resident)
        pl.BlockSpec((c, c * h), lambda i: (0, 0)),      # classifier.weight (resident, lane-dense)
        pl.BlockSpec((1, c),     lambda i: (0, 0)),      # classifier.bias   (resident)
    ]
    out_specs = (
        pl.BlockSpec((tm, c),    lambda i: (i, 0)),      # logits
        pl.BlockSpec((tm, c, h), lambda i: (i, 0, 0)),   # representation
        pl.BlockSpec((tm, h),    lambda i: (i, 0)),      # text_enc
    )
    out_shapes = (
        jax.ShapeDtypeStruct((m_pad, c), jnp.float32),
        jax.ShapeDtypeStruct((m_pad, c, h), cdt),
        jax.ShapeDtypeStruct((m_pad, h), cdt),
    )

    logits, rep, text_enc = pl.pallas_call(
        plm_hyp_kernel,
        out_shape=out_shapes,
        grid=grid,
        in_specs=in_specs,
        out_specs=out_specs,
        compiler_params=pltpu.CompilerParams(
            dimension_semantics=("parallel",),           # independent per-tile -> v7x dual-TC
            vmem_limit_bytes=48 * 1024 * 1024),          # explicit: > v5e 16 MiB default, < v7x 64 MiB
    )(seq, mask3, watt, wcls, bcls2)

    logits = logits[:m]
    rep_vec = rep[:m].reshape(m, c * h)
    text_enc = text_enc[:m]

    # CrossEntropyLoss(reduction='mean') on the host-visible [m, c] logits
    # (args.cl_loss == 0 path) — trivial reduction in XLA, removes lane-sparse
    # per-step kernel outputs.
    lse = jax.nn.logsumexp(logits, axis=-1)
    picked = jnp.take_along_axis(logits, labels[:, None].astype(jnp.int32), axis=-1)[:, 0]
    ce_mean = jnp.mean(lse - picked)
    return {'total_loss': ce_mean, 'CE_loss': ce_mean, 'logits': logits,
            'rep_vec': rep_vec, 'text_enc': text_enc}


def ref_forward(sequence_output, attention_mask, labels, w_att, w_cls, b_cls):
    """Plain-JAX f32 reference mirroring the PyTorch forward (eval-mode dropout)."""
    seq = sequence_output.astype(jnp.float32)
    text_enc = sequence_output[:, 0, :]
    scores = jnp.einsum('msh,ch->mcs', seq, w_att.astype(jnp.float32))
    scores = jnp.where(attention_mask[:, None, :] != 0, scores, -1e30)
    attn = jax.nn.softmax(scores, axis=-1)
    rep = jnp.einsum('mcs,msh->mch', attn, seq)
    rep_vec = rep.reshape(rep.shape[0], -1)
    logits = rep_vec @ w_cls.astype(jnp.float32).T + b_cls.astype(jnp.float32)
    lse = jax.nn.logsumexp(logits, axis=-1)
    picked = jnp.take_along_axis(logits, labels[:, None].astype(jnp.int32), axis=-1)[:, 0]
    ce_mean = jnp.mean(lse - picked)
    return logits, rep_vec, text_enc, ce_mean


if __name__ == "__main__":
    # small shapes: batch m=16 (2 grid tiles of 8), seq s=8, hidden h=32, num_labels c=4
    m, s, h, c = 16, 8, 32, 4

    key = jax.random.PRNGKey(0)
    k1, k2, k3, k4, k5, k6 = jax.random.split(key, 6)

    sequence_output = jax.random.normal(k1, (m, s, h), dtype=jnp.float32)

    # variable-length masks (every row has at least one valid token)
    lengths = 1 + jax.random.randint(k5, (m,), 0, s)                   # in [1, s]
    positions = jnp.arange(s)[None, :]
    attention_mask = (positions < lengths[:, None]).astype(jnp.int32)  # [m, s]
    labels = jax.random.randint(k6, (m,), 0, c).astype(jnp.int32)

    # deterministic parameter init (shapes per nn.Linear in __init__)
    w_att = 0.05 * jax.random.normal(k2, (c, h), dtype=jnp.float32)        # attention.weight
    w_cls = 0.05 * jax.random.normal(k3, (c, c * h), dtype=jnp.float32)    # classifier.weight
    b_cls = 0.01 * jax.random.normal(k4, (c,), dtype=jnp.float32)          # classifier.bias

    # --- f32 path ---
    out = plm_hyp_forward(sequence_output, attention_mask, labels, w_att, w_cls, b_cls)
    jax.block_until_ready(out)

    r_logits, r_rep_vec, r_text, r_loss = ref_forward(
        sequence_output, attention_mask, labels, w_att, w_cls, b_cls)
    # tolerance loosened from 1e-5 because of pl.reciprocal(approx=True) in the softmax
    np.testing.assert_allclose(np.asarray(out['logits']), np.asarray(r_logits), rtol=2e-3, atol=2e-3)
    np.testing.assert_allclose(np.asarray(out['rep_vec']), np.asarray(r_rep_vec), rtol=2e-3, atol=2e-3)
    np.testing.assert_allclose(np.asarray(out['text_enc']), np.asarray(r_text), rtol=1e-6, atol=1e-6)
    np.testing.assert_allclose(np.asarray(out['total_loss']), np.asarray(r_loss), rtol=2e-3, atol=2e-3)
    np.testing.assert_allclose(np.asarray(out['CE_loss']), np.asarray(r_loss), rtol=2e-3, atol=2e-3)

    # --- bf16 path (the intended production input dtype): loose-tolerance smoke test ---
    seq_bf16 = sequence_output.astype(jnp.bfloat16)
    out_bf = plm_hyp_forward(seq_bf16, attention_mask, labels, w_att, w_cls, b_cls)
    jax.block_until_ready(out_bf)
    rb_logits, rb_rep_vec, rb_text, rb_loss = ref_forward(
        seq_bf16.astype(jnp.float32), attention_mask, labels, w_att, w_cls, b_cls)
    np.testing.assert_allclose(np.asarray(out_bf['logits']), np.asarray(rb_logits), rtol=0.1, atol=0.1)
    np.testing.assert_allclose(np.asarray(out_bf['rep_vec'], dtype=np.float32),
                               np.asarray(rb_rep_vec), rtol=0.1, atol=0.1)
    np.testing.assert_allclose(np.asarray(out_bf['text_enc'], dtype=np.float32),
                               np.asarray(rb_text), rtol=1e-2, atol=1e-2)
    np.testing.assert_allclose(np.asarray(out_bf['total_loss']), np.asarray(rb_loss), rtol=0.1, atol=0.1)

    print("KERNEL_OK")
</pallas_src>

<mosaic_0001>
module attributes {stable_mosaic.version = 11 : i64} {
  func.func @plm_hyp_kernel(%arg0: i32, %arg1: memref<8x8x32xf32, #tpu.memory_space<vmem>>, %arg2: memref<8x1x8xi32, #tpu.memory_space<vmem>>, %arg3: memref<4x32xf32, #tpu.memory_space<vmem>>, %arg4: memref<4x128xf32, #tpu.memory_space<vmem>>, %arg5: memref<1x4xf32, #tpu.memory_space<vmem>>, %arg6: memref<8x4xf32, #tpu.memory_space<vmem>>, %arg7: memref<8x4x32xf32, #tpu.memory_space<vmem>>, %arg8: memref<8x32xf32, #tpu.memory_space<vmem>>) attributes {dimension_semantics = [#tpu.dimension_semantics<parallel>], iteration_bounds = array<i64: 2>, scalar_prefetch = 0 : i64, scratch_operands = 0 : i64, tpu.core_type = #tpu.core_type<tc>, window_params = [{transform_indices = @transform_0, window_bounds = array<i64: 8, 8, 32>}, {transform_indices = @transform_1, window_bounds = array<i64: 8, 1, 8>}, {pipeline_mode = #tpu.pipeline_mode<synchronous>, transform_indices = @transform_2, window_bounds = array<i64: 4, 32>}, {pipeline_mode = #tpu.pipeline_mode<synchronous>, transform_indices = @transform_3, window_bounds = array<i64: 4, 128>}, {pipeline_mode = #tpu.pipeline_mode<synchronous>, transform_indices = @transform_4, window_bounds = array<i64: 1, 4>}, {transform_indices = @transform_5, window_bounds = array<i64: 8, 4>}, {transform_indices = @transform_6, window_bounds = array<i64: 8, 4, 32>}, {transform_indices = @transform_7, window_bounds = array<i64: 8, 32>}]} {
    %c0 = arith.constant 0 : index
    %c0_0 = arith.constant 0 : index
    %c0_1 = arith.constant 0 : index
    %0 = vector.load %arg1[%c0, %c0_0, %c0_1] : memref<8x8x32xf32, #tpu.memory_space<vmem>>, vector<8x8x32xf32>
    %c0_2 = arith.constant 0 : index
    %c0_3 = arith.constant 0 : index
    %c0_4 = arith.constant 0 : index
    %1 = vector.load %arg2[%c0_2, %c0_3, %c0_4] : memref<8x1x8xi32, #tpu.memory_space<vmem>>, vector<8x1x8xi32>
    %c0_5 = arith.constant 0 : index
    %c0_6 = arith.constant 0 : index
    %2 = vector.load %arg3[%c0_5, %c0_6] : memref<4x32xf32, #tpu.memory_space<vmem>>, vector<4x32xf32>
    %c0_7 = arith.constant 0 : index
    %c0_8 = arith.constant 0 : index
    %3 = vector.load %arg4[%c0_7, %c0_8] : memref<4x128xf32, #tpu.memory_space<vmem>>, vector<4x128xf32>
    %c0_9 = arith.constant 0 : index
    %c0_10 = arith.constant 0 : index
    %4 = vector.load %arg5[%c0_9, %c0_10] : memref<1x4xf32, #tpu.memory_space<vmem>>, vector<1x4xf32>
    %5 = vector.extract_strided_slice %0 {offsets = [0, 0, 0], sizes = [8, 1, 32], strides = [1, 1, 1]} : vector<8x8x32xf32> to vector<8x1x32xf32>
    %6 = vector.shape_cast %5 : vector<8x1x32xf32> to vector<8x32xf32>
    %c0_11 = arith.constant 0 : index
    %c0_12 = arith.constant 0 : index
    %7 = vector.load %arg8[%c0_11, %c0_12] : memref<8x32xf32, #tpu.memory_space<vmem>>, vector<8x32xf32>
    tpu.vector_store %arg8[%c0_11, %c0_12], %6 {strides = array<i32>} : memref<8x32xf32, #tpu.memory_space<vmem>>, vector<8x32xf32>,
    %8 = vector.shape_cast %0 : vector<8x8x32xf32> to vector<64x32xf32>
    %cst = arith.constant dense<0.000000e+00> : vector<64x4xf32>
    %9 = tpu.matmul %8, %2, %cst {dimension_numbers = #tpu.dot_dimension_numbers<[1], [1], [0], [0], [0, 0, 1, 0], [], []>} : vector<64x32xf32>, vector<4x32xf32>, vector<64x4xf32> -> vector<64x4xf32>
    %10 = vector.shape_cast %9 : vector<64x4xf32> to vector<8x8x4xf32>
    %11 = tpu.transpose %10, [0, 2, 1] : vector<8x8x4xf32> -> vector<8x4x8xf32>
    %c0_i32 = arith.constant 0 : i32
    %12 = vector.broadcast %c0_i32 : i32 to vector<8x1x8xi32>
    %13 = arith.cmpi ne, %1, %12 : vector<8x1x8xi32>
    %cst_13 = arith.constant -1.000000e+30 : f32
    %14 = vector.shape_cast %13 : vector<8x1x8xi1> to vector<8x1x8xi1>
    %15 = vector.broadcast %14 : vector<8x1x8xi1> to vector<8x4x8xi1>
    %16 = vector.broadcast %cst_13 : f32 to vector<8x4x8xf32>
    %17 = arith.select %15, %11, %16 : vector<8x4x8xi1>, vector<8x4x8xf32>
    %cst_14 = arith.constant dense<0xFF800000> : vector<8x4xf32>
    %18 = vector.multi_reduction <maximumf>, %17, %cst_14 [2] : vector<8x4x8xf32> to vector<8x4xf32>
    %19 = vector.shape_cast %18 : vector<8x4xf32> to vector<8x4x1xf32>
    %20 = vector.broadcast %19 : vector<8x4x1xf32> to vector<8x4x8xf32>
    %21 = arith.subf %17, %20 : vector<8x4x8xf32>
    %22 = math.exp %21 : vector<8x4x8xf32>
    %cst_15 = arith.constant dense<0.000000e+00> : vector<8x4xf32>
    %23 = vector.multi_reduction <add>, %22, %cst_15 [2] : vector<8x4x8xf32> to vector<8x4xf32>
    %24 = vector.shape_cast %23 : vector<8x4xf32> to vector<8x4x1xf32>
    %25 = tpu.reciprocal %24 {approx = true} : vector<8x4x1xf32> -> vector<8x4x1xf32>
    %26 = vector.broadcast %25 : vector<8x4x1xf32> to vector<8x4x8xf32>
    %27 = arith.mulf %22, %26 : vector<8x4x8xf32>
    "tpu.trace_start"() <{level = 10 : i32, message = "mcs,msh->mch"}> : () -> ()
    %cst_16 = arith.constant dense<0.000000e+00> : vector<8x4x32xf32>
    %28 = tpu.matmul %27, %0, %cst_16 {dimension_numbers = #tpu.dot_dimension_numbers<[2], [1], [1], [2], [0, 0, 0, 1, 1, 2], [0], [0]>} : vector<8x4x8xf32>, vector<8x8x32xf32>, vector<8x4x32xf32> -> vector<8x4x32xf32>
    "tpu.trace_stop"() : () -> ()
    %c0_17 = arith.constant 0 : index
    %c0_18 = arith.constant 0 : index
    %c0_19 = arith.constant 0 : index
    %29 = vector.load %arg7[%c0_17, %c0_18, %c0_19] : memref<8x4x32xf32, #tpu.memory_space<vmem>>, vector<8x4x32xf32>
    tpu.vector_store %arg7[%c0_17, %c0_18, %c0_19], %28 {strides = array<i32>} : memref<8x4x32xf32, #tpu.memory_space<vmem>>, vector<8x4x32xf32>,
    %30 = vector.shape_cast %28 : vector<8x4x32xf32> to vector<8x128xf32>
    %cst_20 = arith.constant dense<0.000000e+00> : vector<8x4xf32>
    %31 = tpu.matmul %30, %3, %cst_20 {dimension_numbers = #tpu.dot_dimension_numbers<[1], [1], [0], [0], [0, 0, 1, 0], [], []>} : vector<8x128xf32>, vector<4x128xf32>, vector<8x4xf32> -> vector<8x4xf32>
    %32 = vector.broadcast %4 : vector<1x4xf32> to vector<8x4xf32>
    %33 = arith.addf %31, %32 : vector<8x4xf32>
    %c0_21 = arith.constant 0 : index
    %c0_22 = arith.constant 0 : index
    %34 = vector.load %arg6[%c0_21, %c0_22] : memref<8x4xf32, #tpu.memory_space<vmem>>, vector<8x4xf32>
    tpu.vector_store %arg6[%c0_21, %c0_22], %33 {strides = array<i32>} : memref<8x4xf32, #tpu.memory_space<vmem>>, vector<8x4xf32>,
    return
  }
  func.func @transform_0(%arg0: i32) -> (i32, i32, i32) {
    %c0_i32 = arith.constant 0 : i32
    %c0_i32_0 = arith.constant 0 : i32
    %c0_i32_1 = arith.constant 0 : i32
    return %arg0, %c0_i32, %c0_i32_0 : i32, i32, i32
  }
  func.func @transform_1(%arg0: i32) -> (i32, i32, i32) {
    %c0_i32 = arith.constant 0 : i32
    %c0_i32_0 = arith.constant 0 : i32
    %c0_i32_1 = arith.constant 0 : i32
    return %arg0, %c0_i32, %c0_i32_0 : i32, i32, i32
  }
  func.func @transform_2(%arg0: i32) -> (i32, i32) {
    %c0_i32 = arith.constant 0 : i32
    %c0_i32_0 = arith.constant 0 : i32
    %c0_i32_1 = arith.constant 0 : i32
    return %c0_i32, %c0_i32_0 : i32, i32
  }
  func.func @transform_3(%arg0: i32) -> (i32, i32) {
    %c0_i32 = arith.constant 0 : i32
    %c0_i32_0 = arith.constant 0 : i32
    %c0_i32_1 = arith.constant 0 : i32
    return %c0_i32, %c0_i32_0 : i32, i32
  }
  func.func @transform_4(%arg0: i32) -> (i32, i32) {
    %c0_i32 = arith.constant 0 : i32
    %c0_i32_0 = arith.constant 0 : i32
    %c0_i32_1 = arith.constant 0 : i32
    return %c0_i32, %c0_i32_0 : i32, i32
  }
  func.func @transform_5(%arg0: i32) -> (i32, i32) {
    %c0_i32 = arith.constant 0 : i32
    %c0_i32_0 = arith.constant 0 : i32
    return %arg0, %c0_i32 : i32, i32
  }
  func.func @transform_6(%arg0: i32) -> (i32, i32, i32) {
    %c0_i32 = arith.constant 0 : i32
    %c0_i32_0 = arith.constant 0 : i32
    %c0_i32_1 = arith.constant 0 : i32
    return %arg0, %c0_i32, %c0_i32_0 : i32, i32, i32
  }
  func.func @transform_7(%arg0: i32) -> (i32, i32) {
    %c0_i32 = arith.constant 0 : i32
    %c0_i32_0 = arith.constant 0 : i32
    return %arg0, %c0_i32 : i32, i32
  }
}

</mosaic_0001>

<bundles_post_ra>
// kernel: tpu_custom_call.1
= control target key start
LH: loop header
LB: loop body
LE: loop exit
PB: predicated region body
PF: predicated region fallthrough
CT: control target
= control target key end

     0   :  { %s2614_s0 = inlined_call_operand.hbm [shape: f32[16,8,32], index: 0, kind: input, shape index: {}]   ;;  %s2615_s1 = inlined_call_operand.vmem [shape: s32[16,1,8], index: 1, kind: input, shape index: {}]   ;;  %s2616_s2 = inlined_call_operand.vmem [shape: f32[4,32], index: 2, kind: input, shape index: {}]   ;;  %s2617_s3 = inlined_call_operand.vmem [shape: f32[4,128], index: 3, kind: input, shape index: {}]   ;;  %s2618_s4 = inlined_call_operand.vmem [shape: f32[1,4], index: 4, kind: input, shape index: {}]   ;;  %s2619_s5 = inlined_call_operand.vmem [shape: f32[16,4], index: 5, kind: output, shape index: {0}]   ;;  %s2620_s6 = inlined_call_operand.hbm [shape: f32[16,4,32], index: 6, kind: output, shape index: {1}]   ;;  %s2621_s7 = inlined_call_operand.hbm [shape: f32[16,32], index: 7, kind: output, shape index: {2}]  }
   0x1   :  { %2623 = sst [smem:[#allocation11_spill]] %s2614_s0 }
   0x2   :  { %2624 = sst [smem:[#allocation12_spill]] %s2615_s1 }
   0x3   :  { %2625 = sst [smem:[#allocation13_spill]] %s2616_s2 }
   0x4   :  { %13 = vsyncpa [#allocation3], 0 }
   0x5   :  { %15 = vsyncpa [#allocation3 + $0x1], 0 }
   0x6   :  { %16 = vsyncpa [#allocation4], 0 }
   0x7   :  { %18 = vsyncpa [#allocation4 + $0x1], 0 }
   0x8   :  { %19 = vsyncpa [#allocation7], 0 }
   0x9   :  { %21 = vsyncpa [#allocation7 + $0x1], 0  ;;  %s2260_s24 = smov 0   ;;  %s2262_s25 = smov 0  }
   0xa   :  { %s2264_s26 = smov 0   ;;  %s2266_s27 = smov 0  }
   0xb LB: > { %s2281_s28 = sadd.s32 4294967295, %s2204_s27   ;;  %s1857_s29 = sadd.s32 4294967294, %s2204_s27   ;;  %s2204_s27 = sphi %s2266_s27, %s2641_s27   ;;  %s2200_s26 = sphi %s2264_s26, %s2640_s26   ;;  %s2196_s25 = sphi %s2262_s25, %s2639_s25   ;;  %s2192_s24 = sphi %s2260_s24, %s2638_s24  }
   0xc   : > { %s2285_s30 = sadd.s32 1, %s2204_s27   ;;  %s34_s8 = sadd.s32 1, %s2200_s26 }
   0xd   : > { %s31_s9 = ssub.s32 %s2204_s27, %s2285_s30  ;;  %p41_p0 = scmp.ne.s32.totalorder %s2200_s26, %s2196_s25 }
   0xe   : > { %p32_p1 = scmp.eq.s32.totalorder %s31_s9, 0  ;;  %p42_p2 = scmp.eq.s32.totalorder %s2204_s27, 0 }
   0xf   : > { %p47_p3 = scmp.ne.s32.totalorder %s2196_s25, %s2192_s24  ;;  %p48_p4 = scmp.eq.s32.totalorder %s2281_s28, 0 }
  0x10   : > { %s2297_s10 = scalar_select %p32_p1, %s2200_s26, %s34_s8  }
  0x11   : > { %p2299_p5 = por %p42_p2, %p41_p0  ;;  %p2303_p6 = por %p48_p4, %p47_p3 }
  0x12   : > { %p186_p7 = scmp.eq.s32.totalorder %s2281_s28, 1  ;;  %p192_p8 = scmp.eq.s32.totalorder %s1857_s29, 1 }
  0x13   : > { %p1999_p10 = scmp.lt.s32.totalorder %s2204_s27, 2  ;;  %s247_s15 = sand.u32 1, %s2200_s26  }
  0x14   : > { %p2310_p11 = por %p186_p7, %p41_p0  ;;  %p2314_p12 = por %p192_p8, %p47_p3 }
  0x15   : > { %s1894_s16 = sshll.u32 %s2204_s27, 10  ;;  %s1860_s17 = sshll.u32 %s247_s15, 6 }
  0x16   : > { %s2628_s13 = scalar_select %p2310_p11, 1, 0 }
  0x17   : > { %s2629_s14 = scalar_select %p2314_p12, 1, 0 }
  0x18   : > { %s2630_s0 = sld [smem:[#allocation11_spill]]  ;;  %s251_s21 = scalar_lea.vmem [#allocation2], %s1860_s17 }
  0x19   : > { %s258_s22 = sshll.u32 %s251_s21, 4  ;;  %p2327_p13 = pnand %p1999_p10, %p2299_p5  ;;  %s2331_s22 = int_to_ptr.vmem [resolvable:$true] %s258_s22 }
  0x1a   : > { %s2333_s29 = scalar_lea.sflag [#allocation3], %s247_s15 }
  0x1b   : > { %p2078_p1 = pneg %p2327_p13 }
  0x1e   : > { %s2323_s20 = scalar_lea.hbm %s2630_s0, %s1894_s16  ;;  %s2081_s16 = scalar_lea.hbm %s2630_s0, 2048 }
  0x1f   : > { %s2076_s8 = scalar_lea.hbm %s2323_s20, 1024  ;;  %p2082_p4 = scmp.lt.u32.totalorder %s2323_s20, %s2630_s0 }
  0x20   : > { %p2077_p0 = scmp.ne.s32.totalorder %s2323_s20, %s2076_s8  ;;  %p2083_p5 = scmp.lt.u32.totalorder %s2081_s16, %s2076_s8 }
  0x21   : > { %p2085_p8 = scmp.lt.u32.totalorder %s2076_s8, %s2323_s20 }
  0x22   : > { %p2079_p2 = pnand %p2078_p1, %p2077_p0  ;;  %p2084_p7 = por %p2083_p5, %p2082_p4 }
  0x24   : > { %p2080_p3 = pneg %p2079_p2  ;;  %p2086_p10 = por %p2085_p8, %p2084_p7 }
  0x26   : > { %p2087_p9 = pnand %p2086_p10, %p2080_p3 }
  0x28   : > { %2090 = shalt.err (!%p2087_p9)
}
  0x29   : > { %s2091_s15 = scalar_lea.vmem %s2331_s22, 1024  ;;  %s2206_s19 = smov [#allocation2]  }
  0x2a   : > { %p2092_p0 = scmp.ne.s32.totalorder %s2331_s22, %s2091_s15  ;;  %s2096_s21 = sshll.u32 %s2206_s19, 4  ;;  %s2097_s21 = int_to_ptr.vmem [resolvable:$false] %s2096_s21 }
  0x2b   : > { %s2098_s9 = scalar_lea.vmem %s2097_s21, 2048  ;;  %p2099_p11 = scmp.lt.s32.totalorder %s2331_s22, %s2097_s21 }
  0x2c   : > { %p2094_p2 = pnand %p2092_p0, %p2078_p1  ;;  %p2100_p4 = scmp.lt.s32.totalorder %s2098_s9, %s2091_s15 }
  0x2e   : > { %p2095_p12 = pneg %p2094_p2  ;;  %p2101_p5 = por %p2100_p4, %p2099_p11 }
  0x30   : > { %p2102_p7 = pnand %p2101_p5, %p2095_p12 }
  0x32   : > { %2105 = shalt.err (!%p2102_p7)
}
  0x33   : > { %s2207_s8 = smov 128   ;;  %s2208_s11 = smov 8  }
  0x34   : > { %1991 = dma.hbm_to_vmem [thread:$0]  (!%p2327_p13), %s2323_s20, 1024, %s2331_s22, %s2333_s29, %s2207_s8, %s2207_s8, %s2208_s11  }
  0x35   : > { %p1863_p9 = scmp.ge.s32.totalorder %s2204_s27, 1  ;;  %p274_p1 = scmp.lt.s32.totalorder %s2204_s27, 3 }
  0x37   : > { %p275_p3 = pnand %p1863_p9, %p274_p1 }
  0x38   : > { %s2364_s16 = sand.u32 (!%p275_p3), 1, %s2196_s25  }
  0x39   : > { %278 = sbr.rel (%p275_p3) target bundleno = 1313 (0x521), region = 40  ;;  %s1864_s17 = sshll.u32 (!%p275_p3), %s2364_s16, 6 }
  0x3a   : > { %s281_s18 = scalar_lea.sflag (!%p275_p3), [#allocation3], %s2364_s16  ;;  %s284_s15 = scalar_lea.vmem (!%p275_p3), [#allocation2], %s1864_s17 }
  0x40   : > { %2179 = dma.done.wait (%p2303_p6), %s281_s18, 1024  }
  0x41   : > { %2181 = vsyncadd (%p2303_p6), %s281_s18, 4294966272  ;;  %vm388_vm0 = vcmask 261120   ;;  %s2632_s2 = sld [smem:[#allocation13_spill]]  ;;  %v2375_v1 = vld [vmem:[%s284_s15] sm:$0xff]  ;;  %v2381_v2 = vld [vmem:[%s284_s15 + $0x8] sm:$0xff]  ;;  %s1867_s12 = sshll.u32 %s2281_s28, 3  ;;  %v786_v17 = vlaneseq }
  0x42   : > { %1925 = vmatprep.mubr.msk.f32.mxu0 %vm388_vm0, %v2375_v1  ;;  %v2383_v3 = vld [vmem:[%s284_s15 + $0x10] sm:$0xff]  ;;  %v2389_v4 = vld [vmem:[%s284_s15 + $0x18] sm:$0xff]  ;;  %v2391_v5 = vld [vmem:[%s284_s15 + $0x20] sm:$0xff]  ;;  %p330_p6 = scmp.lt.s32.totalorder %s1867_s12, 15  ;;  %s2633_s1 = sld [smem:[#allocation12_spill]]  ;;  %v2209_v22 = vmov 0  }
  0x43   : > { %v2397_v6 = vld [vmem:[%s284_s15 + $0x28] sm:$0xff]  ;;  %v2399_v7 = vld [vmem:[%s284_s15 + $0x30] sm:$0xff]  ;;  %v2405_v8 = vld [vmem:[%s284_s15 + $0x38] sm:$0xff]  ;;  %v2413_v19 = vshrl.u32 %v786_v17, 7  ;;  %vm834_vm7 = vcmask 60416   ;;  %s1865_s21 = sshll.u32 %s2364_s16, 5 }
  0x44   : > { %s2643_s12 = smov (!%p330_p6, %s1867_s12), 15  ;;  %s2488_s9 = scalar_lea.vmem [#allocation5], %s1865_s21 }
  0x45   : > { %v788_v21 = vsub.s32 0, %v2413_v19  ;;  %s2214_s17 = smov 64   ;;  %s2215_s18 = smov 32  }
  0x46   : > { %s2216_s15 = smov 96   ;;  %s1706_s20 = sshll.u32 %s2488_s9, 4  ;;  %s2523_s20 = int_to_ptr.vmem [resolvable:$true] %s1706_s20 }
  0x47   : > { %v355_v0 = vld [vmem:[%s2632_s2] sm:$0xf]  ;;  %s1866_s22 = sshll.u32 %s2364_s16, 3  ;;  %s2106_s11 = scalar_lea.vmem %s2523_s20, 512 }
  0x48   : > { %1923 = vmatprep.subr.msk.mxu0 %vm388_vm0, %v355_v0  ;;  %s332_s19 = scalar_lea.vmem %s2633_s1, %s2643_s12  ;;  %s1895_s12 = sshll.u32 %s2281_s28, 9 }
  0x49   : > { %1924 = vmatpush3.xpose.msk.msra.mxu0 %vm388_vm0, %v355_v0  ;;  %v348_v18 = vld [vmem:[%s332_s19 + $0x1] sm:$0x1]  ;;  %v347_v20 = vld [vmem:[%s332_s19] sm:$0x1]  ;;  %v349_v24 = vld [vmem:[%s332_s19 + $0x2] sm:$0x1]  ;;  %s2530_s21 = scalar_lea.hbm %s2620_s6, %s1895_s12  ;;  %p2107_p11 = scmp.ne.s32.totalorder %s2523_s20, %s2106_s11 }
  0x4a   : > { %vm771_vm1 = vcmp.ne.s32.totalorder %v348_v18, 0  ;;  %vm770_vm2 = vcmp.ne.s32.totalorder %v347_v20, 0  ;;  %v351_v26 = vld [vmem:[%s332_s19 + $0x4] sm:$0x1]  ;;  %v350_v28 = vld [vmem:[%s332_s19 + $0x3] sm:$0x1] }
  0x4b   : > { %v779_v23 = vsel %vm771_vm1, 1, %v2209_v22  ;;  %v778_v27 = vsel %vm770_vm2, 1, %v2209_v22  ;;  %vm772_vm3 = vcmp.ne.s32.totalorder %v349_v24, 0  ;;  %vm774_vm4 = vcmp.ne.s32.totalorder %v351_v26, 0  ;;  %v352_v29 = vld [vmem:[%s332_s19 + $0x5] sm:$0x1] }
  0x4c   : > { %1926 = vmatmul.mubr.msk.f32.vlgmr.msra.gmra.mrb[0].mxu0 %vm388_vm0, %v2381_v2  ;;  %v793_v25 = vrot.slane %v779_v23, %v788_v21  ;;  %v789_v30 = vrot.slane %v778_v27, %v788_v21  ;;  %vm773_vm6 = vcmp.ne.s32.totalorder %v350_v28, 0  ;;  %v353_v31 = vld [vmem:[%s332_s19 + $0x6] sm:$0x1]  ;;  %v780_v32 = vsel %vm772_vm3, 1, %v2209_v22  ;;  %v354_v37 = vld [vmem:[%s332_s19 + $0x7] sm:$0x1] }
  0x4d   : > { %1928 = vmatprep.mubr.msk.f32.mxu0 %vm388_vm0, %v2383_v3  ;;  %v782_v34 = vsel %vm774_vm4, 1, %v2209_v22  ;;  %vm775_vm8 = vcmp.ne.s32.totalorder %v352_v29, 0  ;;  %v781_v36 = vsel %vm773_vm6, 1, %v2209_v22  ;;  %vm776_vm9 = vcmp.ne.s32.totalorder %v353_v31, 0  ;;  %s2532_s8 = scalar_lea.vmem [#allocation6], %s1866_s22  ;;  %p2634_p12 = scmp.ne.s32.totalorder %s2628_s13, 0 }
  0x4e   : > { %vm819_vm5 = vcmp.eq.s32.totalorder %v793_v25, 1  ;;  %vm818_vm10 = vcmp.eq.s32.totalorder %v789_v30, 1  ;;  %v797_v39 = vrot.slane %v780_v32, %v788_v21  ;;  %v805_v40 = vrot.slane %v782_v34, %v788_v21 }
  0x4f   : > { %v783_v41 = vsel %vm775_vm8, 1, %v2209_v22  ;;  %v801_v43 = vrot.slane %v781_v36, %v788_v21  ;;  %v784_v45 = vsel %vm776_vm9, 1, %v2209_v22  ;;  %vm777_vm11 = vcmp.ne.s32.totalorder %v354_v37, 0  ;;  %p2108_p13 = pnand %p2107_p11, %p2634_p12 }
  0x50   : > { %1929 = vmatmul.mubr.msk.f32.gmra.mrb[2].mxu0 %vm388_vm0, %v2389_v4  ;;  %vm820_vm12 = vcmp.eq.s32.totalorder %v797_v39, 1  ;;  %v809_v48 = vrot.slane %v783_v41, %v788_v21  ;;  %vm822_vm13 = vcmp.eq.s32.totalorder %v805_v40, 1  ;;  %v813_v49 = vrot.slane %v784_v45, %v788_v21 }
  0x51   : > { %1931 = vmatprep.mubr.msk.f32.mxu0 %vm388_vm0, %v2391_v5  ;;  %v785_v50 = vsel %vm777_vm11, 1, %v2209_v22  ;;  %vm821_vm14 = vcmp.eq.s32.totalorder %v801_v43, 1  ;;  %vm2211_vm3 = vmmov 0   ;;  %vm923_vm4 = vcmask 64512   ;;  %p2109_p8 = pneg %p2108_p13 }
  0x52   : > { %vm823_vm15 = vcmp.eq.s32.totalorder %v809_v48, 1  ;;  %v817_v56 = vrot.slane %v785_v50, %v788_v21  ;;  %vm824_vm1 = vcmp.eq.s32.totalorder %v813_v49, 1  ;;  %vm1598_vm6 = vcmask 523264  }
  0x53   : > { %vm367_vm8 = vcmask 1041409   ;;  %vm370_vm9 = vcmask 1042434   ;;  %vm376_vm11 = vcmask 1044484  }
  0x54   : > { %1932 = vmatmul.mubr.msk.f32.gmra.mrb[4].mxu0 %vm388_vm0, %v2397_v6  ;;  %vm825_vm2 = vcmp.eq.s32.totalorder %v817_v56, 1 }
  0x55   : > { %1934 = vmatprep.mubr.msk.f32.mxu0 %vm388_vm0, %v2399_v7 }
  0x58   : > { %1935 = vmatmul.mubr.msk.f32.gmra.mrb[6].mxu0 %vm388_vm0, %v2405_v8 }
 0x11f   : > { %v1927_v9 = vpop.f32.mrb[0].mxu0 }
 0x120   : > { %546 = vxpose.xlu0.b32.start.end [1/1] (short) (narrow) %v1927_v9, 8  ;;  %v475_v10 = vpop.f32.mrb[1].mxu0 }
 0x123   : > { %v1930_v11 = vpop.f32.mrb[2].mxu0 }
 0x124   : > { %514 = vxpose.xlu0.b32.start.end [1/1] (short) (narrow) %v475_v10, 8  ;;  %610 = vxpose.xlu1.b32.start.end [1/1] (short) (narrow) %v1930_v11, 8  ;;  %v485_v12 = vpop.f32.mrb[3].mxu0 }
 0x127   : > { %v1933_v13 = vpop.f32.mrb[4].mxu0 }
 0x128   : > { %578 = vxpose.xlu1.b32.start.end [1/1] (short) (narrow) %v485_v12, 8  ;;  %v495_v14 = vpop.f32.mrb[5].mxu0 }
 0x129   : > { %642 = vxpose.xlu0.b32.start.end [1/1] (short) (narrow) %v495_v14, 8 }
 0x12b   : > { %v1936_v15 = vpop.f32.mrb[6].mxu0 }
 0x12c   : > { %v505_v16 = vpop.f32.mrb[7].mxu0  ;;  %674 = vxpose.xlu1.b32.start.end [1/1] (short) (narrow) %v1933_v13, 8 }
 0x12d   : > { %706 = vxpose.xlu0.b32.start.end [1/1] (short) (narrow) %v505_v16, 8 }
 0x130   : > { %738 = vxpose.xlu1.b32.start.end [1/1] (short) (narrow) %v1936_v15, 8 }
 0x1a0   : > { %v562_v33 = vpop.trf.xlu0 }
 0x1a1   : > { %v827_v35 = vsel %vm819_vm5, %v562_v33, -1e+30  ;;  %vm1508_vm5 = vcmask 257024  }
 0x1a2   : > { %v838_v38 = vsel %vm834_vm7, %v827_v35, -inf }
 0x1a3   : > { %839 = vmax.xlane.f32.xlu1 %v838_v38 }
 0x1a4   : > { %v530_v42 = vpop.trf.xlu0  ;;  %v626_v44 = vpop.trf.xlu1 }
 0x1a5   : > { %v826_v46 = vsel %vm818_vm10, %v530_v42, -1e+30  ;;  %v829_v57 = vsel %vm821_vm14, %v626_v44, -1e+30  ;;  %vm373_vm10 = vcmask 1043459   ;;  %vm385_vm14 = vcmask 1047559  }
 0x1a6   : > { %v835_v47 = vsel %vm834_vm7, %v826_v46, -inf  ;;  %v844_v63 = vsel %vm834_vm7, %v829_v57, -inf }
 0x1a7   : > { %836 = vmax.xlane.f32.xlu0 %v835_v47 }
 0x1a8   : > { %v594_v51 = vpop.trf.xlu1 }
 0x1a9   : > { %v828_v52 = vsel %vm820_vm12, %v594_v51, -1e+30  ;;  %v658_v53 = vpop.trf.xlu0  ;;  %vm379_vm12 = vcmask 1045509  }
 0x1aa   : > { %v830_v54 = vsel %vm822_vm13, %v658_v53, -1e+30  ;;  %v841_v55 = vsel %vm834_vm7, %v828_v52, -inf  ;;  %vm382_vm13 = vcmask 1046534  }
 0x1ab   : > { %842 = vmax.xlane.f32.xlu1 %v841_v55  ;;  %v847_v58 = vsel %vm834_vm7, %v830_v54, -inf }
 0x1ac   : > { %848 = vmax.xlane.f32.xlu0 %v847_v58  ;;  %v690_v59 = vpop.trf.xlu1 }
 0x1ad   : > { %v722_v60 = vpop.trf.xlu0  ;;  %v831_v61 = vsel %vm823_vm15, %v690_v59, -1e+30 }
 0x1ae   : > { %v832_v62 = vsel %vm824_vm1, %v722_v60, -1e+30  ;;  %v850_v9 = vsel %vm834_vm7, %v831_v61, -inf }
 0x1af   : > { %845 = vmax.xlane.f32.xlu1 %v844_v63  ;;  %v853_v0 = vsel %vm834_vm7, %v832_v62, -inf }
 0x1b0   : > { %854 = vmax.xlane.f32.xlu0 %v853_v0  ;;  %v754_v10 = vpop.trf.xlu1 }
 0x1b1   : > { %v833_v11 = vsel %vm825_vm2, %v754_v10, -1e+30 }
 0x1b2   : > { %v856_v12 = vsel %vm834_vm7, %v833_v11, -inf }
 0x1b3   : > { %851 = vmax.xlane.f32.xlu1 %v850_v9 }
 0x1b7   : > { %857 = vmax.xlane.f32.xlu1 %v856_v12 }
 0x230   : > { %v840_v13 = vpop.xlane.xlu1 %839 }
 0x231   : > { %v860_v14 = vsub.f32 %v827_v35, %v840_v13 }
 0x233   : > { %v869_v15 = vmul.f32 1.442695, %v860_v14 }
 0x234   : > { %v837_v16 = vpop.xlane.xlu0 %836 }
 0x235   : > { %2044 = vpow2.f32 %v869_v15  ;;  %v859_v17 = vsub.f32 %v826_v46, %v837_v16 }
 0x237   : > { %v867_v18 = vmul.f32 1.442695, %v859_v17 }
 0x238   : > { %v843_v20 = vpop.xlane.xlu1 %842 }
 0x239   : > { %2046 = vpow2.f32 %v867_v18  ;;  %v861_v21 = vsub.f32 %v828_v52, %v843_v20  ;;  %v849_v22 = vpop.xlane.xlu0 %848 }
 0x23a   : > { %v863_v23 = vsub.f32 %v830_v54, %v849_v22  ;;  %v2210_v54 = vmov 0.0  }
 0x23b   : > { %v871_v24 = vmul.f32 1.442695, %v861_v21  ;;  %1937 = vmatprep.subr.mxu1 %v2210_v54  ;;  %1962 = vmatprep.subr.mxu0 %v2210_v54 }
 0x23c   : > { %v875_v25 = vmul.f32 1.442695, %v863_v23  ;;  %v846_v26 = vpop.xlane.xlu1 %845  ;;  %1938 = vmatpush3.msra.mxu1 %v2375_v1  ;;  %1939 = vmatprep.mubr.msk.f32.mxu1 %vm2211_vm3, %v2210_v54 }
 0x23d   : > { %2048 = vpow2.f32 %v871_v24  ;;  %v862_v27 = vsub.f32 %v829_v57, %v846_v26  ;;  %v855_v28 = vpop.xlane.xlu0 %854  ;;  %1942 = vmatprep.subr.mxu1 %v2210_v54  ;;  %1963 = vmatpush3.msra.mxu0 %v2397_v6  ;;  %v2212_v26 = vmov 1983009808  }
 0x23e   : > { %v865_v29 = vsub.f32 %v832_v62, %v855_v28  ;;  %2050 = vpow2.f32 %v875_v25  ;;  %1964 = vmatprep.mubr.msk.f32.mxu0 %vm2211_vm3, %v2210_v54  ;;  %1972 = vmatprep.subr.mxu0 %v2210_v54 }
 0x23f   : > { %v2424_v30 = vpop.eup %2044  ;;  %v873_v31 = vmul.f32 1.442695, %v862_v27  ;;  %v1519_v27 = vunpack.c.l.s4 %v2212_v26 }
 0x240   : > { %v879_v32 = vmul.f32 1.442695, %v865_v29  ;;  %v852_v33 = vpop.xlane.xlu1 %851  ;;  %v886_v34 = vsel %vm834_vm7, %v2424_v30, 0.0 }
 0x241   : > { %2052 = vpow2.f32 %v873_v31  ;;  %v864_v35 = vsub.f32 %v831_v61, %v852_v33  ;;  %887 = vadd.xlane.f32.xlu1 %v886_v34 }
 0x242   : > { %2054 = vpow2.f32 %v879_v32 }
 0x243   : > { %v2047_v36 = vpop.eup %2046  ;;  %v877_v37 = vmul.f32 1.442695, %v864_v35 }
 0x244   : > { %v858_v38 = vpop.xlane.xlu1 %857  ;;  %v883_v39 = vsel %vm834_vm7, %v2047_v36, 0.0 }
 0x245   : > { %2056 = vpow2.f32 %v877_v37  ;;  %v866_v40 = vsub.f32 %v833_v11, %v858_v38  ;;  %884 = vadd.xlane.f32.xlu0 %v883_v39 }
 0x247   : > { %v2049_v41 = vpop.eup %2048  ;;  %v881_v42 = vmul.f32 1.442695, %v866_v40 }
 0x248   : > { %v889_v43 = vsel %vm834_vm7, %v2049_v41, 0.0  ;;  %v2430_v44 = vpop.eup %2050 }
 0x249   : > { %2058 = vpow2.f32 %v881_v42  ;;  %890 = vadd.xlane.f32.xlu0 %v889_v43  ;;  %v895_v47 = vsel %vm834_vm7, %v2430_v44, 0.0  ;;  %v2213_v42 = vmov 1934713408  }
 0x24a   : > { %v1552_v43 = vunpack.c.l.s4 %v2213_v42 }
 0x24b   : > { %v2053_v45 = vpop.eup %2052 }
 0x24c   : > { %v892_v46 = vsel %vm834_vm7, %v2053_v45, 0.0  ;;  %v2435_v48 = vpop.eup %2054 }
 0x24d   : > { %893 = vadd.xlane.f32.xlu1 %v892_v46  ;;  %896 = vadd.xlane.f32.xlu0 %v895_v47  ;;  %v901_v51 = vsel %vm834_vm7, %v2435_v48, 0.0 }
 0x24f   : > { %v2057_v49 = vpop.eup %2056 }
 0x250   : > { %v898_v50 = vsel %vm834_vm7, %v2057_v49, 0.0 }
 0x251   : > { %899 = vadd.xlane.f32.xlu1 %v898_v50  ;;  %902 = vadd.xlane.f32.xlu0 %v901_v51  ;;  %v356_v51 = vld [vmem:[%s2617_s3] sm:$0xf] }
 0x253   : > { %v2059_v52 = vpop.eup %2058 }
 0x254   : > { %v904_v53 = vsel %vm834_vm7, %v2059_v52, 0.0  ;;  %vm1600_vm7 = vcmask 785408  }
 0x255   : > { %905 = vadd.xlane.f32.xlu1 %v904_v53 }
 0x2ce   : > { %v888_v55 = vpop.xlane.xlu1 %887 }
 0x2d2   : > { %v885_v56 = vpop.xlane.xlu0 %884 }
 0x2d3   : > { %2060 = vrcp.f32 %v885_v56 }
 0x2d4   : > { %2062 = vrcp.f32 %v888_v55 }
 0x2d6   : > { %v891_v57 = vpop.xlane.xlu0 %890 }
 0x2d7   : > { %2064 = vrcp.f32 %v891_v57 }
 0x2da   : > { %v894_v58 = vpop.xlane.xlu1 %893  ;;  %v897_v59 = vpop.xlane.xlu0 %896 }
 0x2db   : > { %2066 = vrcp.f32 %v894_v58 }
 0x2dd   : > { %v2061_v60 = vpop.eup %2060 }
 0x2de   : > { %v900_v61 = vpop.xlane.xlu1 %899  ;;  %v915_v62 = vmul.f32 %v2061_v60, %v2047_v36  ;;  %v2063_v63 = vpop.eup %2062 }
 0x2df   : > { %2068 = vrcp.f32 %v900_v61  ;;  %v916_v0 = vmul.f32 %v2063_v63, %v2424_v30  ;;  %v903_v9 = vpop.xlane.xlu0 %902  ;;  %v1520_v30 = vunpack.c.0.s8 %v1519_v27 }
 0x2e0   : > { %1940 = vmatmul.mubr.msk.f32.vlgmr.msra.gmra.mrb[0].mxu1 %vm923_vm4, %v915_v62  ;;  %2070 = vrcp.f32 %v897_v59 }
 0x2e1   : > { %1943 = vmatpush3.msra.mxu1 %v2381_v2  ;;  %1944 = vmatprep.mubr.msk.f32.mxu1 %vm2211_vm3, %v2210_v54  ;;  %v2065_v11 = vpop.eup %2064  ;;  %v1523_v34 = vsub.s32 %v1520_v30, %v2413_v19 }
 0x2e2   : > { %v906_v10 = vpop.xlane.xlu1 %905  ;;  %1947 = vmatprep.subr.mxu1 %v2210_v54  ;;  %v917_v12 = vmul.f32 %v2065_v11, %v2049_v41 }
 0x2e3   : > { %2072 = vrcp.f32 %v906_v10 }
 0x2e4   : > { %1945 = vmatmul.mubr.msk.f32.vlgmr.msra.gmra.mrb[2].mxu1 %vm923_vm4, %v916_v0  ;;  %2074 = vrcp.f32 %v903_v9 }
 0x2e5   : > { %1948 = vmatpush3.msra.mxu1 %v2383_v3  ;;  %1949 = vmatprep.mubr.msk.f32.mxu1 %vm2211_vm3, %v2210_v54  ;;  %v2067_v13 = vpop.eup %2066 }
 0x2e6   : > { %1952 = vmatprep.subr.mxu1 %v2210_v54  ;;  %v918_v15 = vmul.f32 %v2067_v13, %v2053_v45 }
 0x2e8   : > { %1950 = vmatmul.mubr.msk.f32.vlgmr.msra.gmra.mrb[4].mxu1 %vm923_vm4, %v917_v12 }
 0x2e9   : > { %v2069_v14 = vpop.eup %2068  ;;  %1953 = vmatpush3.msra.mxu1 %v2389_v4  ;;  %1954 = vmatprep.mubr.msk.f32.mxu1 %vm2211_vm3, %v2210_v54 }
 0x2ea   : > { %v920_v16 = vmul.f32 %v2069_v14, %v2057_v49  ;;  %1957 = vmatprep.subr.mxu1 %v2210_v54  ;;  %v2071_v17 = vpop.eup %2070 }
 0x2eb   : > { %v919_v20 = vmul.f32 %v2071_v17, %v2430_v44 }
 0x2ec   : > { %1955 = vmatmul.mubr.msk.f32.vlgmr.msra.gmra.mrb[6].mxu1 %vm923_vm4, %v918_v15  ;;  %1965 = vmatmul.mubr.msk.f32.vlgmr.msra.gmra.mrb[8].mxu0 %vm923_vm4, %v920_v16 }
 0x2ed   : > { %v2073_v18 = vpop.eup %2072  ;;  %1958 = vmatpush3.msra.mxu1 %v2391_v5  ;;  %1959 = vmatprep.mubr.msk.f32.mxu1 %vm2211_vm3, %v2210_v54 }
 0x2ee   : > { %v922_v21 = vmul.f32 %v2073_v18, %v2059_v52  ;;  %1967 = vmatprep.subr.mxu1 %v2210_v54  ;;  %1973 = vmatpush3.msra.mxu0 %v2405_v8  ;;  %v2075_v22 = vpop.eup %2074  ;;  %v1553_v52 = vunpack.c.0.s8 %v1552_v43  ;;  %v366_v18 = vrot.slane %v2381_v2, 7  ;;  %v378_v2 = vrot.slane %v2397_v6, 3 }
 0x2ef   : > { %1974 = vmatprep.mubr.msk.f32.mxu0 %vm2211_vm3, %v2210_v54  ;;  %v921_v23 = vmul.f32 %v2075_v22, %v2435_v48  ;;  %v372_v22 = vrot.slane %v2389_v4, 5  ;;  %v384_v4 = vrot.slane %v2405_v8, 1 }
 0x2f0   : > { %1960 = vmatmul.mubr.msk.f32.vlgmr.msra.gmra.mrb[8].mxu1 %vm923_vm4, %v919_v20  ;;  %1975 = vmatmul.mubr.msk.f32.vlgmr.msra.gmra.mrb[10].mxu0 %vm923_vm4, %v922_v21  ;;  %v1556_v58 = vsub.s32 %v1553_v52, %v2413_v19  ;;  %v369_v20 = vrot.slane %v2383_v3, 6  ;;  %v368_v21 = vsel %vm367_vm8, %v366_v18, %v2375_v1  ;;  %v381_v3 = vrot.slane %v2399_v7, 2 }
 0x2f1   : > { %1968 = vmatpush3.msra.mxu1 %v2399_v7  ;;  %1969 = vmatprep.mubr.msk.f32.mxu1 %vm2211_vm3, %v2210_v54 }
 0x2f2   : > { %1977 = vmatprep.subr.mxu1 %v2210_v54 }
 0x2f4   : > { %1970 = vmatmul.mubr.msk.f32.vlgmr.msra.gmra.mrb[10].mxu1 %vm923_vm4, %v921_v23  ;;  %v371_v23 = vsel %vm370_vm9, %v369_v20, %v368_v21 }
 0x2f5   : > { %1979 = vmatprep.mubr.msk.f32.mxu1 %vm2211_vm3, %v2210_v54 }
 0x2f8   : > { %1978 = vmatpush3.xpose.msra.mxu1 %v356_v51 }
 0x3b3   : > { %v993_v24 = vpop.f32.mrb[0].mxu1 }
 0x3b4   : > { %1509 = vst.msk [vmem:[%s2488_s9] sm:$0xf] %vm1508_vm5, %v993_v24  ;;  %v1941_v25 = vpop.f32.mrb[1].mxu1 }
 0x3b5   : > { %v374_v25 = vsel %vm373_vm10, %v372_v22, %v371_v23 }
 0x3b7   : > { %v1066_v28 = vpop.f32.mrb[2].mxu1 }
 0x3b8   : > { %1510 = vst.msk [vmem:[%s2488_s9 + $0x4] sm:$0xf] %vm1508_vm5, %v1066_v28  ;;  %v1946_v29 = vpop.f32.mrb[3].mxu1 }
 0x3bb   : > { %v1139_v31 = vpop.f32.mrb[4].mxu1 }
 0x3bc   : > { %1511 = vst.msk [vmem:[%s2488_s9 + $0x8] sm:$0xf] %vm1508_vm5, %v1139_v31  ;;  %v1517_v32 = vcombine.low %v993_v24, %v1139_v31  ;;  %v1951_v33 = vpop.f32.mrb[5].mxu1  ;;  %v375_v24 = vrot.slane %v2391_v5, 4 }
 0x3be   : > { %v1524_v40 = vrot.slane %v1517_v32, %v1523_v34  ;;  %v377_v26 = vsel %vm376_vm11, %v375_v24, %v374_v25 }
 0x3bf   : > { %v1212_v35 = vpop.f32.mrb[6].mxu1  ;;  %v1358_v36 = vpop.f32.mrb[8].mxu0  ;;  %v380_v1 = vsel %vm379_vm12, %v378_v2, %v377_v26 }
 0x3c0   : > { %1512 = vst.msk [vmem:[%s2488_s9 + $0xc] sm:$0xf] %vm1508_vm5, %v1212_v35  ;;  %v1525_v37 = vcombine.low %v1066_v28, %v1212_v35  ;;  %1514 = vst.msk [vmem:[%s2488_s9 + $0x14] sm:$0xf] %vm1508_vm5, %v1358_v36  ;;  %v1956_v38 = vpop.f32.mrb[7].mxu1  ;;  %v1966_v39 = vpop.f32.mrb[9].mxu0  ;;  %v383_v27 = vsel %vm382_vm13, %v381_v3, %v380_v1 }
 0x3c1   : > { %v386_v5 = vsel %vm385_vm14, %v384_v4, %v383_v27 }
 0x3c2   : > { %v1532_v41 = vrot.slane %v1525_v37, %v1523_v34  ;;  %389 = vst.msk [vmem:[%s2532_s8] sm:$0xff] %vm388_vm0, %v386_v5 }
 0x3c3   : > { %v1285_v44 = vpop.f32.mrb[8].mxu1  ;;  %v1504_v45 = vpop.f32.mrb[10].mxu0 }
 0x3c4   : > { %v1549_v46 = vcombine.low %v1524_v40, %v1532_v41  ;;  %v1550_v47 = vcombine.high %v1524_v40, %v1532_v41  ;;  %1513 = vst.msk [vmem:[%s2488_s9 + $0x10] sm:$0xf] %vm1508_vm5, %v1285_v44  ;;  %1516 = vst.msk [vmem:[%s2488_s9 + $0x1c] sm:$0xf] %vm1508_vm5, %v1504_v45  ;;  %v1541_v48 = vcombine.low %v1358_v36, %v1504_v45  ;;  %v1961_v49 = vpop.f32.mrb[9].mxu1  ;;  %v1976_v50 = vpop.f32.mrb[11].mxu0 }
 0x3c6   : > { %v1548_v56 = vrot.slane %v1541_v48, %v1523_v34  ;;  %v1564_v61 = vrot.slane %v1550_v47, %v1556_v58  ;;  %v1557_v63 = vrot.slane %v1549_v46, %v1556_v58 }
 0x3c7   : > { %v1431_v53 = vpop.f32.mrb[10].mxu1 }
 0x3c8   : > { %1515 = vst.msk [vmem:[%s2488_s9 + $0x18] sm:$0xf] %vm1508_vm5, %v1431_v53  ;;  %v1533_v54 = vcombine.low %v1285_v44, %v1431_v53  ;;  %v1971_v55 = vpop.f32.mrb[11].mxu1  ;;  %s1685_s9 = scalar_lea.sflag [#allocation4], %s2364_s16 }
 0x3ca   : > { %v1540_v57 = vrot.slane %v1533_v54, %v1523_v34 }
 0x3cc   : > { %v1565_v59 = vcombine.low %v1540_v57, %v1548_v56  ;;  %v1566_v60 = vcombine.high %v1540_v57, %v1548_v56 }
 0x3ce   : > { %v1580_v62 = vrot.slane %v1566_v60, %v1556_v58  ;;  %v1573_v0 = vrot.slane %v1565_v59, %v1556_v58 }
 0x3d0   : > { %v1583_v9 = vcombine.low %v1564_v61, %v1580_v62  ;;  %v1582_v10 = vcombine.high %v1557_v63, %v1573_v0  ;;  %v1584_v11 = vcombine.high %v1564_v61, %v1580_v62  ;;  %v1581_v12 = vcombine.low %v1557_v63, %v1573_v0 }
 0x3d2   : > { %1590 = vrot.lane.b32.xlu1 %v1583_v9, %s2214_s17  ;;  %1586 = vrot.lane.b32.xlu0 %v1582_v10, %s2215_s18  ;;  %s2217_s18 = smov [#allocation5]  }
 0x3d6   : > { %1594 = vrot.lane.b32.xlu1 %v1584_v11, %s2216_s15  ;;  %s2110_s15 = sshll.u32 %s2217_s18, 4  ;;  %s2111_s15 = int_to_ptr.vmem [resolvable:$false] %s2110_s15 }
 0x3d7   : > { %s2112_s23 = scalar_lea.vmem %s2111_s15, 1024  ;;  %p2113_p10 = scmp.lt.s32.totalorder %s2523_s20, %s2111_s15 }
 0x3d8   : > { %p2114_p0 = scmp.lt.s32.totalorder %s2112_s23, %s2106_s11 }
 0x3da   : > { %p2115_p2 = por %p2114_p0, %p2113_p10 }
 0x3dc   : > { %p2116_p4 = pnand %p2115_p2, %p2109_p8 }
 0x444   : > { %v1591_v13 = vpop.permute.xlu1 %1590  ;;  %v1587_v14 = vpop.permute.xlu0 %1586 }
 0x445   : > { %v1597_v19 = vsel %vm388_vm0, %v1581_v12, %v1587_v14 }
 0x446   : > { %v1599_v16 = vsel %vm1598_vm6, %v1597_v19, %v1591_v13 }
 0x448   : > { %v1595_v15 = vpop.permute.xlu1 %1594 }
 0x449   : > { %v1601_v17 = vsel %vm1600_vm7, %v1599_v16, %v1595_v15 }
 0x44a   : > { %1980 = vmatmul.mubr.f32.vlgmr.msra.gmra.mrb[12].mxu1 %v1601_v17 }
 0x44b   : > { %2119 = shalt.err (!%p2116_p4)
}
 0x44c   : > { %s2120_s22 = scalar_lea.hbm %s2530_s21, 512  ;;  %s2124_s19 = scalar_lea.hbm %s2620_s6, 1024 }
 0x44d   : > { %p2121_p5 = scmp.ne.s32.totalorder %s2530_s21, %s2120_s22  ;;  %p2125_p1 = scmp.lt.u32.totalorder %s2530_s21, %s2620_s6 }
 0x44e   : > { %p2126_p3 = scmp.lt.u32.totalorder %s2124_s19, %s2120_s22  ;;  %p2128_p11 = scmp.lt.u32.totalorder %s2120_s22, %s2530_s21 }
 0x44f   : > { %p2122_p7 = pnand %p2121_p5, %p2634_p12 }
 0x450   : > { %p2127_p6 = por %p2126_p3, %p2125_p1 }
 0x451   : > { %p2123_p9 = pneg %p2122_p7 }
 0x452   : > { %p2129_p13 = por %p2128_p11, %p2127_p6 }
 0x454   : > { %p2130_p8 = pnand %p2129_p13, %p2123_p9 }
 0x456   : > { %2133 = shalt.err (!%p2130_p8)
}
 0x457   : > { %s2218_s23 = smov 4   ;;  %s2635_s11 = sshll.u32 %s2281_s28, 7 }
 0x458   : > { %1984 = dma.vmem_to_hbm [thread:$0]  (%p2634_p12), %s2523_s20, 512, %s2530_s21, %s1685_s9, %s2214_s17, %s2214_s17, %s2218_s23  }
 0x459   : > { %s2567_s29 = scalar_lea.hbm %s2621_s7, %s2635_s11  ;;  %s1722_s19 = sshll.u32 %s2532_s8, 4  ;;  %s1723_s19 = int_to_ptr.vmem [resolvable:$true] %s1722_s19 }
 0x45a   : > { %s1690_s18 = scalar_lea.sflag [#allocation7], %s2364_s16  ;;  %s2134_s15 = scalar_lea.vmem %s1723_s19, 128 }
 0x45b   : > { %p2135_p10 = scmp.ne.s32.totalorder %s1723_s19, %s2134_s15  ;;  %s2219_s0 = smov [#allocation6]  }
 0x45c   : > { %s2138_s1 = sshll.u32 %s2219_s0, 4  ;;  %s2139_s1 = int_to_ptr.vmem [resolvable:$false] %s2138_s1 }
 0x45d   : > { %p2136_p0 = pnand %p2135_p10, %p2634_p12  ;;  %s2140_s2 = scalar_lea.vmem %s2139_s1, 256 }
 0x45e   : > { %p2141_p4 = scmp.lt.s32.totalorder %s1723_s19, %s2139_s1  ;;  %p2142_p5 = scmp.lt.s32.totalorder %s2140_s2, %s2134_s15 }
 0x45f   : > { %p2137_p2 = pneg %p2136_p0 }
 0x460   : > { %p2143_p7 = por %p2142_p5, %p2141_p4 }
 0x462   : > { %p2144_p9 = pnand %p2143_p7, %p2137_p2 }
 0x464   : > { %2147 = shalt.err (!%p2144_p9)
}
 0x465   : > { %s2148_s16 = scalar_lea.hbm %s2567_s29, 128  ;;  %s2152_s0 = scalar_lea.hbm %s2621_s7, 256 }
 0x466   : > { %p2149_p1 = scmp.ne.s32.totalorder %s2567_s29, %s2148_s16  ;;  %p2153_p11 = scmp.lt.u32.totalorder %s2567_s29, %s2621_s7 }
 0x467   : > { %p2154_p13 = scmp.lt.u32.totalorder %s2152_s0, %s2148_s16  ;;  %p2156_p10 = scmp.lt.u32.totalorder %s2148_s16, %s2567_s29 }
 0x468   : > { %p2150_p3 = pnand %p2149_p1, %p2634_p12 }
 0x469   : > { %p2155_p8 = por %p2154_p13, %p2153_p11 }
 0x46a   : > { %p2151_p6 = pneg %p2150_p3 }
 0x46b   : > { %p2157_p0 = por %p2156_p10, %p2155_p8 }
 0x46d   : > { %p2158_p2 = pnand %p2157_p0, %p2151_p6 }
 0x46f   : > { %2161 = shalt.err (!%p2158_p2)
}
 0x470   : > { %1985 = dma.vmem_to_hbm [thread:$0]  (%p2634_p12), %s1723_s19, 128, %s2567_s29, %s1690_s18   ;;  %v1886_v6 = vld [vmem:[%s2618_s4] ss:$0 sm:$0xff]  ;;  %vm1678_vm0 = vcmask 31744  }
 0x471   : > { %p334_p4 = scmp.lt.s32.totalorder %s2281_s28, 1 }
 0x473   : > { %s2645_s28 = smov (!%p334_p4, %s2281_s28), 1 }
 0x474   : > { %s1868_s2 = sshll.u32 %s2645_s28, 3 }
 0x475   : > { %s337_s12 = scalar_lea.vmem %s2619_s5, %s1868_s2 }
 0x51d   : > { %v1674_v7 = vpop.f32.mrb[12].mxu1 }
 0x51e   : > { %v1675_v8 = vadd.f32 %v1886_v6, %v1674_v7  ;;  %v1981_v28 = vpop.f32.mrb[13].mxu1 }
 0x520   : > { %1679 = vst.msk [vmem:[%s337_s12] sm:$0xff] %vm1678_vm0, %v1675_v8 }
 0x521 PF: > { %s1741_s13 = sand.u32 1, %s2192_s24   ;;  %p2636_p12 = scmp.ne.s32.totalorder %s2629_s14, 0 }
 0x522   : > { %p2637_p5 = scmp.ge.s32.totalorder %s2204_s27, 2  ;;  %s1742_s28 = scalar_lea.sflag [#allocation4], %s1741_s13 }
 0x524   : > { %p1993_p7 = pnand %p2637_p5, %p2636_p12 }
 0x526   : > { %2183 = dma.done.wait (!%p1993_p7), %s1742_s28, 512  }
 0x527   : > { %2185 = vsyncadd (!%p1993_p7), %s1742_s28, 4294966784  ;;  %s1751_s22 = scalar_lea.sflag [#allocation7], %s1741_s13 }
 0x528   : > { %2187 = dma.done.wait (!%p1993_p7), %s1751_s22, 128  }
 0x529   : > { %2189 = vsyncadd (!%p1993_p7), %s1751_s22, 4294967168  ;;  %p24_p9 = scmp.ge.s32.totalorder %s2285_s30, 4   ;;  %s2638_s24 = smov %s2196_s25 }
 0x52a   : > { %s2639_s25 = smov %s2200_s26  ;;  %s2640_s26 = smov %s2297_s10 }
 0x52b   : > { %s2641_s27 = smov %s2285_s30  ;;  %26 = sbr.rel (!%p24_p9) target bundleno = 11 (0xb), region = 117 }
 0x532   :  { %1756 = vsyncpa [#allocation3], 1 }
 0x533   :  { %1758 = vsyncpa [#allocation3 + $0x1], 1 }
 0x534   :  { %1759 = vsyncpa [#allocation4], 1 }
 0x535   :  { %1761 = vsyncpa [#allocation4 + $0x1], 1 }
 0x536   :  { %1762 = vsyncpa [#allocation7], 1 }
 0x537   :  { %1764 = vsyncpa [#allocation7 + $0x1], 1 }

</bundles_post_ra>
